<compile_context>
chip_gen: v7x
topology: tpu7x:2x2x1
jax: 0.10.0
libtpu: 0.0.40
codegen_flags: <defaults>
</compile_context>

<pallas_src>
import jax
import jax.numpy as jnp
from jax.experimental import pallas as pl
from jax.experimental.pallas import tpu as pltpu


def mlp_kernel(x_ref,
               w0_ref, b0_ref,
               w1_ref, b1_ref,
               w2_ref, b2_ref,
               w3_ref, b3_ref,
               o_ref):
    # x_ref: [in_size, batch_tile]  (batch on lanes)
    # wK_ref: [out_k, in_k] (PyTorch layout), bK_ref: [out_k, 1]
    h = x_ref[...]

    h = jnp.dot(w0_ref[...], h, preferred_element_type=jnp.float32) + b0_ref[...]
    h = jnp.maximum(h, 0.0)

    h = jnp.dot(w1_ref[...], h, preferred_element_type=jnp.float32) + b1_ref[...]
    h = jnp.maximum(h, 0.0)

    h = jnp.dot(w2_ref[...], h, preferred_element_type=jnp.float32) + b2_ref[...]
    h = jnp.maximum(h, 0.0)

    h = jnp.dot(w3_ref[...], h, preferred_element_type=jnp.float32) + b3_ref[...]
    # final layer: no ReLU (i == layer_num in the PyTorch loop)

    o_ref[...] = h.astype(o_ref.dtype)


def mlp_forward(x, params, *, batch_tile=256):
    """x: [B, in_size] float32.

    params: list of (W[out, in], b[out, 1]) in native PyTorch Linear layout.
    Returns [B, out_size].
    """
    assert batch_tile % 128 == 0, "batch_tile must be a multiple of 128 (lane dim)"
    B, in_size = x.shape
    out_size = params[-1][0].shape[0]

    # Pad batch up to a multiple of batch_tile (pad columns are zeros; they are
    # computed but sliced off below, so there is no ragged-tile issue).
    n_tiles = pl.cdiv(B, batch_tile)
    B_pad = n_tiles * batch_tile
    x_t = jnp.zeros((in_size, B_pad), x.dtype).at[:, :B].set(x.T)

    # flatten params into a single arg list: w0,b0,w1,b1,...
    flat = []
    for w, b in params:
        flat += [w, b]

    # Weights/biases are tiny; keep each as one full block resident for the
    # whole grid (constant index_map).
    def full_spec(arr):
        return pl.BlockSpec(arr.shape, lambda i: (0, 0))

    in_specs = [pl.BlockSpec((in_size, batch_tile), lambda i: (0, i))]
    in_specs += [full_spec(a) for a in flat]

    out_t = pl.pallas_call(
        mlp_kernel,
        out_shape=jax.ShapeDtypeStruct((out_size, B_pad), x.dtype),
        grid_spec=pltpu.PrefetchScalarGridSpec(
            num_scalar_prefetch=0,
            grid=(n_tiles,),
            in_specs=in_specs,
            out_specs=pl.BlockSpec((out_size, batch_tile), lambda i: (0, i)),
        ),
        compiler_params=pltpu.CompilerParams(
            dimension_semantics=("parallel",)),
    )(x_t, *flat)

    # slice off padded batch columns and return in [B, out_size] convention
    return out_t[:, :B].T


def init_params(key, in_size=9, out_size=1, hidden_sizes=(10, 10, 10)):
    """Deterministic init mimicking nn.Linear's U(-1/sqrt(fan_in), 1/sqrt(fan_in)).

    Weights are kept in the native PyTorch layout [out, in]; biases as [out, 1].
    """
    sizes_in = [in_size] + list(hidden_sizes)
    sizes_out = list(hidden_sizes) + [out_size]
    params = []
    for in_s, out_s in zip(sizes_in, sizes_out):
        key, kw, kb = jax.random.split(key, 3)
        bound = 1.0 / (in_s ** 0.5)
        w = jax.random.uniform(kw, (out_s, in_s), jnp.float32, -bound, bound)
        b = jax.random.uniform(kb, (out_s, 1), jnp.float32, -bound, bound)
        params.append((w, b))
    return params


def mlp_reference(x, params):
    h = x
    n = len(params)
    for i, (w, b) in enumerate(params):
        h = h @ w.T + b[:, 0]
        if i < n - 1:
            h = jnp.maximum(h, 0.0)
    return h


if __name__ == "__main__":
    key = jax.random.PRNGKey(0)
    k_x, k_p = jax.random.split(key)

    # Small shapes consistent with the module defaults (in_size=9, out_size=1).
    # NOTE: at batch=8 a Pallas kernel is pure launch overhead; the kernel is
    # designed to pay off at B in the thousands (batch_tile=256..1024).
    batch, in_size = 8, 9
    x = jax.random.normal(k_x, (batch, in_size), jnp.float32)
    params = init_params(k_p, in_size=in_size, out_size=1, hidden_sizes=(10, 10, 10))

    out = mlp_forward(x, params, batch_tile=256)
    out = jax.block_until_ready(out)

    ref = mlp_reference(x, params)
    assert out.shape == (batch, 1), out.shape
    assert jnp.allclose(out, ref, atol=1e-5, rtol=1e-5), (out, ref)

    print("KERNEL_OK")
</pallas_src>

<mosaic_0001>
module attributes {stable_mosaic.version = 11 : i64} {
  func.func @mlp_kernel(%arg0: i32, %arg1: memref<9x256xf32, #tpu.memory_space<vmem>>, %arg2: memref<10x9xf32, #tpu.memory_space<vmem>>, %arg3: memref<10x1xf32, #tpu.memory_space<vmem>>, %arg4: memref<10x10xf32, #tpu.memory_space<vmem>>, %arg5: memref<10x1xf32, #tpu.memory_space<vmem>>, %arg6: memref<10x10xf32, #tpu.memory_space<vmem>>, %arg7: memref<10x1xf32, #tpu.memory_space<vmem>>, %arg8: memref<1x10xf32, #tpu.memory_space<vmem>>, %arg9: memref<1x1xf32, #tpu.memory_space<vmem>>, %arg10: memref<1x256xf32, #tpu.memory_space<vmem>>) attributes {dimension_semantics = [#tpu.dimension_semantics<parallel>], iteration_bounds = array<i64: 1>, scalar_prefetch = 0 : i64, scratch_operands = 0 : i64, tpu.core_type = #tpu.core_type<tc>, window_params = [{transform_indices = @transform_0, window_bounds = array<i64: 9, 256>}, {pipeline_mode = #tpu.pipeline_mode<synchronous>, transform_indices = @transform_1, window_bounds = array<i64: 10, 9>}, {pipeline_mode = #tpu.pipeline_mode<synchronous>, transform_indices = @transform_2, window_bounds = array<i64: 10, 1>}, {pipeline_mode = #tpu.pipeline_mode<synchronous>, transform_indices = @transform_3, window_bounds = array<i64: 10, 10>}, {pipeline_mode = #tpu.pipeline_mode<synchronous>, transform_indices = @transform_4, window_bounds = array<i64: 10, 1>}, {pipeline_mode = #tpu.pipeline_mode<synchronous>, transform_indices = @transform_5, window_bounds = array<i64: 10, 10>}, {pipeline_mode = #tpu.pipeline_mode<synchronous>, transform_indices = @transform_6, window_bounds = array<i64: 10, 1>}, {pipeline_mode = #tpu.pipeline_mode<synchronous>, transform_indices = @transform_7, window_bounds = array<i64: 1, 10>}, {pipeline_mode = #tpu.pipeline_mode<synchronous>, transform_indices = @transform_8, window_bounds = array<i64: 1, 1>}, {transform_indices = @transform_9, window_bounds = array<i64: 1, 256>}]} {
    %c0 = arith.constant 0 : index
    %c0_0 = arith.constant 0 : index
    %0 = vector.load %arg1[%c0, %c0_0] : memref<9x256xf32, #tpu.memory_space<vmem>>, vector<9x256xf32>
    %c0_1 = arith.constant 0 : index
    %c0_2 = arith.constant 0 : index
    %1 = vector.load %arg2[%c0_1, %c0_2] : memref<10x9xf32, #tpu.memory_space<vmem>>, vector<10x9xf32>
    %cst = arith.constant dense<0.000000e+00> : vector<10x256xf32>
    %2 = tpu.matmul %1, %0, %cst {dimension_numbers = #tpu.dot_dimension_numbers<[1], [0], [0], [1], [0, 0, 1, 1], [], []>} : vector<10x9xf32>, vector<9x256xf32>, vector<10x256xf32> -> vector<10x256xf32>
    %c0_3 = arith.constant 0 : index
    %c0_4 = arith.constant 0 : index
    %3 = vector.load %arg3[%c0_3, %c0_4] : memref<10x1xf32, #tpu.memory_space<vmem>>, vector<10x1xf32>
    %4 = vector.broadcast %3 : vector<10x1xf32> to vector<10x256xf32>
    %5 = arith.addf %2, %4 : vector<10x256xf32>
    %cst_5 = arith.constant 0.000000e+00 : f32
    %6 = vector.broadcast %cst_5 : f32 to vector<10x256xf32>
    %7 = arith.maximumf %5, %6 : vector<10x256xf32>
    %c0_6 = arith.constant 0 : index
    %c0_7 = arith.constant 0 : index
    %8 = vector.load %arg4[%c0_6, %c0_7] : memref<10x10xf32, #tpu.memory_space<vmem>>, vector<10x10xf32>
    %cst_8 = arith.constant dense<0.000000e+00> : vector<10x256xf32>
    %9 = tpu.matmul %8, %7, %cst_8 {dimension_numbers = #tpu.dot_dimension_numbers<[1], [0], [0], [1], [0, 0, 1, 1], [], []>} : vector<10x10xf32>, vector<10x256xf32>, vector<10x256xf32> -> vector<10x256xf32>
    %c0_9 = arith.constant 0 : index
    %c0_10 = arith.constant 0 : index
    %10 = vector.load %arg5[%c0_9, %c0_10] : memref<10x1xf32, #tpu.memory_space<vmem>>, vector<10x1xf32>
    %11 = vector.broadcast %10 : vector<10x1xf32> to vector<10x256xf32>
    %12 = arith.addf %9, %11 : vector<10x256xf32>
    %cst_11 = arith.constant 0.000000e+00 : f32
    %13 = vector.broadcast %cst_11 : f32 to vector<10x256xf32>
    %14 = arith.maximumf %12, %13 : vector<10x256xf32>
    %c0_12 = arith.constant 0 : index
    %c0_13 = arith.constant 0 : index
    %15 = vector.load %arg6[%c0_12, %c0_13] : memref<10x10xf32, #tpu.memory_space<vmem>>, vector<10x10xf32>
    %cst_14 = arith.constant dense<0.000000e+00> : vector<10x256xf32>
    %16 = tpu.matmul %15, %14, %cst_14 {dimension_numbers = #tpu.dot_dimension_numbers<[1], [0], [0], [1], [0, 0, 1, 1], [], []>} : vector<10x10xf32>, vector<10x256xf32>, vector<10x256xf32> -> vector<10x256xf32>
    %c0_15 = arith.constant 0 : index
    %c0_16 = arith.constant 0 : index
    %17 = vector.load %arg7[%c0_15, %c0_16] : memref<10x1xf32, #tpu.memory_space<vmem>>, vector<10x1xf32>
    %18 = vector.broadcast %17 : vector<10x1xf32> to vector<10x256xf32>
    %19 = arith.addf %16, %18 : vector<10x256xf32>
    %cst_17 = arith.constant 0.000000e+00 : f32
    %20 = vector.broadcast %cst_17 : f32 to vector<10x256xf32>
    %21 = arith.maximumf %19, %20 : vector<10x256xf32>
    %c0_18 = arith.constant 0 : index
    %c0_19 = arith.constant 0 : index
    %22 = vector.load %arg8[%c0_18, %c0_19] : memref<1x10xf32, #tpu.memory_space<vmem>>, vector<1x10xf32>
    %cst_20 = arith.constant dense<0.000000e+00> : vector<1x256xf32>
    %23 = tpu.matmul %22, %21, %cst_20 {dimension_numbers = #tpu.dot_dimension_numbers<[1], [0], [0], [1], [0, 0, 1, 1], [], []>} : vector<1x10xf32>, vector<10x256xf32>, vector<1x256xf32> -> vector<1x256xf32>
    %c0_21 = arith.constant 0 : index
    %c0_22 = arith.constant 0 : index
    %24 = vector.load %arg9[%c0_21, %c0_22] : memref<1x1xf32, #tpu.memory_space<vmem>>, vector<1x1xf32>
    %25 = vector.broadcast %24 : vector<1x1xf32> to vector<1x256xf32>
    %26 = arith.addf %23, %25 : vector<1x256xf32>
    %c0_23 = arith.constant 0 : index
    %c0_24 = arith.constant 0 : index
    %27 = vector.load %arg10[%c0_23, %c0_24] : memref<1x256xf32, #tpu.memory_space<vmem>>, vector<1x256xf32>
    tpu.vector_store %arg10[%c0_23, %c0_24], %26 {strides = array<i32>} : memref<1x256xf32, #tpu.memory_space<vmem>>, vector<1x256xf32>,
    return
  }
  func.func @transform_0(%arg0: i32) -> (i32, i32) {
    %c0_i32 = arith.constant 0 : i32
    %c0_i32_0 = arith.constant 0 : i32
    return %c0_i32, %arg0 : i32, i32
  }
  func.func @transform_1(%arg0: i32) -> (i32, i32) {
    %c0_i32 = arith.constant 0 : i32
    %c0_i32_0 = arith.constant 0 : i32
    %c0_i32_1 = arith.constant 0 : i32
    return %c0_i32, %c0_i32_0 : i32, i32
  }
  func.func @transform_2(%arg0: i32) -> (i32, i32) {
    %c0_i32 = arith.constant 0 : i32
    %c0_i32_0 = arith.constant 0 : i32
    %c0_i32_1 = arith.constant 0 : i32
    return %c0_i32, %c0_i32_0 : i32, i32
  }
  func.func @transform_3(%arg0: i32) -> (i32, i32) {
    %c0_i32 = arith.constant 0 : i32
    %c0_i32_0 = arith.constant 0 : i32
    %c0_i32_1 = arith.constant 0 : i32
    return %c0_i32, %c0_i32_0 : i32, i32
  }
  func.func @transform_4(%arg0: i32) -> (i32, i32) {
    %c0_i32 = arith.constant 0 : i32
    %c0_i32_0 = arith.constant 0 : i32
    %c0_i32_1 = arith.constant 0 : i32
    return %c0_i32, %c0_i32_0 : i32, i32
  }
  func.func @transform_5(%arg0: i32) -> (i32, i32) {
    %c0_i32 = arith.constant 0 : i32
    %c0_i32_0 = arith.constant 0 : i32
    %c0_i32_1 = arith.constant 0 : i32
    return %c0_i32, %c0_i32_0 : i32, i32
  }
  func.func @transform_6(%arg0: i32) -> (i32, i32) {
    %c0_i32 = arith.constant 0 : i32
    %c0_i32_0 = arith.constant 0 : i32
    %c0_i32_1 = arith.constant 0 : i32
    return %c0_i32, %c0_i32_0 : i32, i32
  }
  func.func @transform_7(%arg0: i32) -> (i32, i32) {
    %c0_i32 = arith.constant 0 : i32
    %c0_i32_0 = arith.constant 0 : i32
    %c0_i32_1 = arith.constant 0 : i32
    return %c0_i32, %c0_i32_0 : i32, i32
  }
  func.func @transform_8(%arg0: i32) -> (i32, i32) {
    %c0_i32 = arith.constant 0 : i32
    %c0_i32_0 = arith.constant 0 : i32
    %c0_i32_1 = arith.constant 0 : i32
    return %c0_i32, %c0_i32_0 : i32, i32
  }
  func.func @transform_9(%arg0: i32) -> (i32, i32) {
    %c0_i32 = arith.constant 0 : i32
    %c0_i32_0 = arith.constant 0 : i32
    return %c0_i32, %arg0 : i32, i32
  }
}

</mosaic_0001>

<bundles_post_ra>
// kernel: tpu_custom_call.1
= control target key start
LH: loop header
LB: loop body
LE: loop exit
PB: predicated region body
PF: predicated region fallthrough
CT: control target
= control target key end

     0   :  { %s764_s0 = inlined_call_operand.vmem [shape: f32[9,256], index: 0, kind: input, shape index: {}]   ;;  %s765_s1 = inlined_call_operand.vmem [shape: f32[10,9], index: 1, kind: input, shape index: {}]   ;;  %s766_s2 = inlined_call_operand.vmem [shape: f32[10,1], index: 2, kind: input, shape index: {}]   ;;  %s767_s3 = inlined_call_operand.vmem [shape: f32[10,10], index: 3, kind: input, shape index: {}]   ;;  %s768_s4 = inlined_call_operand.vmem [shape: f32[10,1], index: 4, kind: input, shape index: {}]   ;;  %s769_s5 = inlined_call_operand.hbm [shape: f32[10,10], index: 5, kind: input, shape index: {}]   ;;  %s770_s6 = inlined_call_operand.vmem [shape: f32[10,1], index: 6, kind: input, shape index: {}]   ;;  %s771_s7 = inlined_call_operand.vmem [shape: f32[1,10], index: 7, kind: input, shape index: {}]   ;;  %s772_s8 = inlined_call_operand.<no memory space> [shape: f32[1,1], index: 8, kind: input, shape index: {}]   ;;  %s773_s9 = inlined_call_operand.hbm [shape: f32[1,256], index: 9, kind: output, shape index: {}]  }
   0x1   :  { %v14_v0 = vstv %s772_s8 }
   0x2   :  { %15 = vst [vmem:[#allocation2] sm:$0x1] %v14_v0 }
   0x3   :  { %16 = vsyncpa [#allocation4], 0 }
   0x4   :  { %17 = vsyncpa [#allocation5], 0  ;;  %s604_s11 = smov [#allocation3]   ;;  %s556_s15 = scalar_lea.hbm %s769_s5, 256 }
   0x5   :  { %s33_s12 = sshll.u32 %s604_s11, 4  ;;  %p557_p0 = scmp.ne.s32.totalorder %s769_s5, %s556_s15  ;;  %s34_s12 = int_to_ptr.vmem [resolvable:$true] %s33_s12 }
   0x6   :  { %p560_p1 = scmp.lt.u32.totalorder %s556_s15, %s769_s5 }
   0x8   :  { %p562_p2 = pnand %p560_p1, %p557_p0 }
   0xa   :  { %565 = shalt.err (!%p562_p2)
}
   0xb   :  { %s566_s8 = scalar_lea.vmem %s34_s12, 256  ;;  %p571_p4 = scmp.lt.s32.totalorder %s34_s12, %s34_s12 }
   0xc   :  { %p567_p3 = scmp.ne.s32.totalorder %s34_s12, %s566_s8  ;;  %p572_p5 = scmp.lt.s32.totalorder %s566_s8, %s566_s8 }
   0xe   :  { %p573_p6 = por %p572_p5, %p571_p4 }
  0x10   :  { %p574_p7 = pnand %p573_p6, %p567_p3 }
  0x12   :  { %577 = shalt.err (!%p574_p7)
}
  0x13   :  { %s605_s20 = smov 128   ;;  %s606_s21 = smov 8  }
  0x14   :  { %39 = dma.hbm_to_vmem [thread:$0]  %s769_s5, 256, %s34_s12, [#allocation4], %s605_s20, %s605_s20, %s606_s21  }
  0x15   :  { %600 = dma.done.wait [#allocation4], 256  }
  0x16   :  { %601 = vsyncadd [#allocation4], 4294967040  ;;  %v607_v1 = vmov 0.0   ;;  %v608_v2 = vmov 0   ;;  %vm74_vm0 = vcmask 1040384   ;;  %vm609_vm1 = vmmov 1  }
  0x17   :  { %145 = vmatprep.mubr.f32.mxu0 %v607_v1  ;;  %254 = vmatprep.mubr.f32.mxu1 %v607_v1  ;;  %vm523_vm2 = vmpackc.low %vm74_vm0, %vm609_vm1  ;;  %v50_v3 = vld [vmem:[%s764_s0 + $0x8] sm:$0xff]  ;;  %v52_v4 = vld [vmem:[%s764_s0 + $0x18] sm:$0x1]  ;;  %vm67_vm3 = vcmask 72704   ;;  %vm183_vm4 = vcmask 1041408   ;;  %vm176_vm6 = vcmask 80896  }
  0x18   :  { %554 = vset.pattern.permute.xlu0 %v608_v2  ;;  %555 = vset.pattern.permute.xlu1 %v608_v2  ;;  %v49_v5 = vld [vmem:[%s764_s0] sm:$0xff]  ;;  %v522_v6 = vpack.c.bf16 %v52_v4, %v50_v3  ;;  %v51_v7 = vld [vmem:[%s764_s0 + $0x10] sm:$0x1]  ;;  %v56_v11 = vld [vmem:[%s766_s2 + $0x8] sm:$0x3]  ;;  %s611_s25 = smov [#allocation6]  }
  0x19   :  { %v525_v8 = vpack.c.bf16 %v51_v7, %v49_v5  ;;  %v55_v9 = vld [vmem:[%s766_s2] sm:$0xff]  ;;  %v54_v12 = vld [vmem:[%s765_s1 + $0x8] sm:$0x3]  ;;  %vm719_vm5 = vmpackc.low %vm183_vm4, %vm609_vm1  ;;  %s498_s26 = sshll.u32 %s611_s25, 4  ;;  %s499_s26 = int_to_ptr.vmem [resolvable:$true] %s498_s26 }
  0x1a   :  { %524 = vmatprep.subr.msk.bf16.mxu0 %vm523_vm2, %v522_v6  ;;  %59 = vperm.xlu0 %554, %v55_v9   ;;  %v53_v10 = vld [vmem:[%s765_s1] sm:$0xff]  ;;  %v165_v16 = vld [vmem:[%s768_s4 + $0x8] sm:$0x3]  ;;  %p583_p9 = scmp.lt.s32.totalorder %s499_s26, %s499_s26 }
  0x1b   :  { %527 = vmatpush1.bf16.msk.msra.mxu0 %vm523_vm2, %v525_v8  ;;  %v273_v13 = vld [vmem:[%s770_s6] sm:$0xff]  ;;  %v274_v17 = vld [vmem:[%s770_s6 + $0x8] sm:$0x3]  ;;  %v385_v8 = vlaneseq }
  0x1c   :  { %v379_v14 = vld [vmem:[#allocation2] sm:$0x1]  ;;  %v163_v36 = vld [vmem:[%s767_s3 + $0x8] sm:$0x3] }
  0x1d   :  { %v164_v15 = vld [vmem:[%s768_s4] sm:$0xff]  ;;  %v272_v54 = vld [vmem:[#allocation3 + $0x8] sm:$0x3]  ;;  %v386_v9 = vshrl.u32 %v385_v8, 7  ;;  %vm489_vm7 = vcmp.lt.s32.totalorder %v385_v8, 256 }
  0x1e   :  { %509 = vmatmul.mubr.msk.f32.vlgmr.msra.gmra.mrb[0].mxu0 %vm67_vm3, %v53_v10  ;;  %64 = vperm.xlu0 %554, %v56_v11   ;;  %v162_v35 = vld [vmem:[%s767_s3] sm:$0xff]  ;;  %v610_v10 = vmov 1966171168  }
  0x1f   :  { %151 = vmatprep.mubr.f32.mxu0 %v607_v1  ;;  %168 = vperm.xlu1 %555, %v164_v15   ;;  %v271_v53 = vld [vmem:[#allocation3] sm:$0xff]  ;;  %v473_v11 = vunpack.c.l.s4 %v610_v10 }
  0x22   :  { %510 = vmatmul.mubr.msk.f32.gmra.mrb[2].mxu0 %vm67_vm3, %v54_v12  ;;  %277 = vperm.xlu0 %554, %v273_v13   ;;  %v387_v12 = vsub.s32 0, %v386_v9 }
  0x23   :  { %361 = vmatprep.mubr.f32.mxu0 %v607_v1  ;;  %173 = vperm.xlu1 %555, %v165_v16  }
  0x26   :  { %382 = vperm.xlu0 %554, %v379_v14   ;;  %v474_v14 = vunpack.c.0.s8 %v473_v11 }
  0x27   :  { %282 = vperm.xlu1 %555, %v274_v17  }
  0x99   :  { %v60_v18 = vpop.permute.xlu0 %59 }
  0x9d   :  { %v65_v22 = vpop.permute.xlu0 %64 }
  0x9e   :  { %v169_v37 = vpop.permute.xlu1 %168 }
  0xa1   :  { %v278_v57 = vpop.permute.xlu0 %277 }
  0xa2   :  { %v174_v41 = vpop.permute.xlu1 %173 }
  0xa5   :  { %v383_v13 = vpop.permute.xlu0 %382 }
  0xa6   :  { %v283_v59 = vpop.permute.xlu1 %282  ;;  %v388_v15 = vrot.slane %v383_v13, %v387_v12 }
  0xf1   :  { %v147_v19 = vpop.f32.mrb[0].mxu0 }
  0xf2   :  { %v149_v20 = vpop.f32.mrb[1].mxu0  ;;  %v148_v21 = vadd.f32 %v147_v19, %v60_v18 }
  0xf3   :  { %v150_v23 = vadd.f32 %v149_v20, %v60_v18  ;;  %v477_v20 = vsub.s32 %v474_v14, %v386_v9 }
  0xf4   :  { %v158_v28 = vmax.f32 %v148_v21, 0.0 }
  0xf5   :  { %v153_v24 = vpop.f32.mrb[2].mxu0  ;;  %v159_v30 = vmax.f32 %v150_v23, 0.0 }
  0xf6   :  { %v154_v25 = vadd.f32 %v153_v24, %v65_v22  ;;  %v155_v26 = vpop.f32.mrb[3].mxu0 }
  0xf7   :  { %v156_v27 = vadd.f32 %v155_v26, %v65_v22 }
  0xf8   :  { %v160_v29 = vmax.f32 %v154_v25, 0.0 }
  0xf9   :  { %v161_v31 = vmax.f32 %v156_v27, 0.0 }
  0xfa   :  { %v531_v33 = vpack.c.bf16 %v160_v29, %v158_v28 }
  0xfb   :  { %v528_v34 = vpack.c.bf16 %v161_v31, %v159_v30 }
  0xfd   :  { %530 = vmatprep.subr.msk.bf16.mxu1 %vm719_vm5, %v528_v34 }
  0xfe   :  { %533 = vmatpush1.bf16.msk.msra.mxu1 %vm719_vm5, %v531_v33 }
 0x101   :  { %513 = vmatmul.mubr.msk.f32.vlgmr.msra.gmra.mrb[0].mxu1 %vm176_vm6, %v162_v35 }
 0x102   :  { %260 = vmatprep.mubr.f32.mxu1 %v607_v1 }
 0x105   :  { %514 = vmatmul.mubr.msk.f32.gmra.mrb[2].mxu1 %vm176_vm6, %v163_v36 }
 0x106   :  { %462 = vmatprep.mubr.f32.mxu1 %v607_v1 }
 0x1d4   :  { %v256_v38 = vpop.f32.mrb[0].mxu1 }
 0x1d5   :  { %v258_v39 = vpop.f32.mrb[1].mxu1  ;;  %v257_v40 = vadd.f32 %v256_v38, %v169_v37 }
 0x1d6   :  { %v259_v42 = vadd.f32 %v258_v39, %v169_v37 }
 0x1d7   :  { %v267_v47 = vmax.f32 %v257_v40, 0.0 }
 0x1d8   :  { %v262_v43 = vpop.f32.mrb[2].mxu1  ;;  %v268_v49 = vmax.f32 %v259_v42, 0.0 }
 0x1d9   :  { %v263_v44 = vadd.f32 %v262_v43, %v174_v41  ;;  %v264_v45 = vpop.f32.mrb[3].mxu1 }
 0x1da   :  { %v265_v46 = vadd.f32 %v264_v45, %v174_v41 }
 0x1db   :  { %v269_v48 = vmax.f32 %v263_v44, 0.0 }
 0x1dc   :  { %v270_v50 = vmax.f32 %v265_v46, 0.0 }
 0x1dd   :  { %v537_v51 = vpack.c.bf16 %v269_v48, %v267_v47 }
 0x1de   :  { %v534_v52 = vpack.c.bf16 %v270_v50, %v268_v49 }
 0x1e0   :  { %536 = vmatprep.subr.msk.bf16.mxu0 %vm719_vm5, %v534_v52 }
 0x1e1   :  { %539 = vmatpush1.bf16.msk.msra.mxu0 %vm719_vm5, %v537_v51 }
 0x1e4   :  { %517 = vmatmul.mubr.msk.f32.vlgmr.msra.gmra.mrb[4].mxu0 %vm176_vm6, %v271_v53 }
 0x1e5   :  { %367 = vmatprep.mubr.f32.mxu0 %v607_v1  ;;  %v378_v1 = vld [vmem:[%s771_s7] sm:$0x1]  ;;  %s578_s7 = scalar_lea.vmem %s499_s26, 32 }
 0x1e6   :  { %p579_p8 = scmp.ne.s32.totalorder %s499_s26, %s578_s7  ;;  %p584_p10 = scmp.lt.s32.totalorder %s578_s7, %s578_s7 }
 0x1e8   :  { %518 = vmatmul.mubr.msk.f32.gmra.mrb[6].mxu0 %vm176_vm6, %v272_v54  ;;  %p585_p11 = por %p584_p10, %p583_p9 }
 0x1ea   :  { %p586_p12 = pnand %p585_p11, %p579_p8 }
 0x2b7   :  { %v363_v55 = vpop.f32.mrb[4].mxu0 }
 0x2b8   :  { %v365_v56 = vpop.f32.mrb[5].mxu0  ;;  %v364_v58 = vadd.f32 %v363_v55, %v278_v57 }
 0x2b9   :  { %v366_v60 = vadd.f32 %v365_v56, %v278_v57 }
 0x2ba   :  { %v374_v2 = vmax.f32 %v364_v58, 0.0 }
 0x2bb   :  { %v369_v61 = vpop.f32.mrb[6].mxu0  ;;  %v375_v4 = vmax.f32 %v366_v60, 0.0 }
 0x2bc   :  { %v370_v62 = vadd.f32 %v369_v61, %v283_v59  ;;  %v371_v63 = vpop.f32.mrb[7].mxu0 }
 0x2bd   :  { %v372_v0 = vadd.f32 %v371_v63, %v283_v59 }
 0x2be   :  { %v376_v3 = vmax.f32 %v370_v62, 0.0 }
 0x2bf   :  { %v377_v5 = vmax.f32 %v372_v0, 0.0 }
 0x2c0   :  { %v543_v6 = vpack.c.bf16 %v376_v3, %v374_v2 }
 0x2c1   :  { %v540_v7 = vpack.c.bf16 %v377_v5, %v375_v4 }
 0x2c3   :  { %542 = vmatprep.subr.msk.bf16.mxu1 %vm719_vm5, %v540_v7 }
 0x2c4   :  { %545 = vmatpush1.bf16.msk.msra.mxu1 %vm719_vm5, %v543_v6 }
 0x2c7   :  { %521 = vmatmul.mubr.msk.f32.vlgmr.msra.gmra.mrb[4].mxu1 %vm176_vm6, %v378_v1 }
 0x39a   :  { %v464_v16 = vpop.f32.mrb[4].mxu1 }
 0x39b   :  { %v465_v17 = vadd.f32 %v464_v16, %v388_v15  ;;  %v466_v18 = vpop.f32.mrb[5].mxu1 }
 0x39c   :  { %v467_v19 = vadd.f32 %v466_v18, %v388_v15 }
 0x39e   :  { %v471_v21 = vcombine.low %v465_v17, %v467_v19 }
 0x3a0   :  { %v478_v22 = vrot.slane %v471_v21, %v477_v20 }
 0x3a2   :  { %v485_v23 = vrot.slane %v478_v22, %v477_v20 }
 0x3a4   :  { %491 = vst.msk [vmem:[#allocation6] sm:$0x3] %vm489_vm7, %v485_v23 }
 0x3a5   :  { %589 = shalt.err (!%p586_p12)
}
 0x3a6   :  { %s590_s28 = scalar_lea.hbm %s773_s9, 32 }
 0x3a7   :  { %p591_p13 = scmp.ne.s32.totalorder %s773_s9, %s590_s28  ;;  %p594_p0 = scmp.lt.u32.totalorder %s590_s28, %s773_s9 }
 0x3a9   :  { %p596_p1 = pnand %p594_p0, %p591_p13 }
 0x3ab   :  { %599 = shalt.err (!%p596_p1)
}
 0x3ac   :  { %501 = dma.vmem_to_hbm [thread:$0]  %s499_s26, 32, %s773_s9, [#allocation5]  }
 0x3ad   :  { %602 = dma.done.wait [#allocation5], 32  }
 0x3ae   :  { %603 = vsyncadd [#allocation5], 4294967264 }
 0x3af   :  { %505 = vsyncpa [#allocation4], 1 }
 0x3b0   :  { %506 = vsyncpa [#allocation5], 1 }

</bundles_post_ra>
